<compile_context>
chip_gen: v6e
topology: v6e:2x2x1
jax: 0.10.0
libtpu: 0.0.40
codegen_flags: <defaults>
</compile_context>

<pallas_src>
import jax
import jax.numpy as jnp
from jax.experimental import pallas as pl
from jax.experimental.pallas import tpu as pltpu

# ---- model hyper-parameters (small, consistent with the module) -------------
N_STATE = 32
N_HIDDEN = 32
N_RB = 8
SEQ_LEN = 8

# ---- lane-dense packed layout ------------------------------------------------
K_PAD = 128                      # activation / weight contraction dim (padded)
N_PAD = 128                      # output lane dim (padded)
BIAS_COL = N_STATE + N_HIDDEN    # column of the activation row that holds 1.0
                                 # (row of the slab that holds the fused bias)


def _qmix_kernel(a_ref, w_ref, out_ref):
    """Entire forward: one (1,128)@(128,128) MXU matmul, one lane-dense store."""
    out_ref[...] = jnp.dot(
        a_ref[...], w_ref[...], preferred_element_type=jnp.float32
    ).astype(out_ref.dtype)


def pack_params(w_in, b_in, w_hid, b_hid, w_fc, b_fc):
    """One-time transform of the parameters into a single (128,128) f32 slab.

    Weights are expected in (in, out) layout (PyTorch Linear.weight transposed).
    The two-linear collapse reassociates fp32 sums (not bit-exact vs. the
    reference, but well within 1e-5 relative error at these scales); the
    zero padding and bias folding are exact.
    """
    w1 = jnp.concatenate([w_in, w_hid], axis=0)              # (64, 32)
    W = w1 @ w_fc                                            # (64, N_RB) collapsed weight
    b = (b_in + b_hid) @ w_fc + b_fc                         # (N_RB,)    collapsed bias

    slab = jnp.zeros((K_PAD, N_PAD), jnp.float32)
    slab = slab.at[:N_STATE + N_HIDDEN, :N_RB].set(W)
    slab = slab.at[BIAS_COL, :N_RB].set(b)                   # bias row (activation col 64 == 1)
    return slab                                              # 64 KiB, trivially VMEM-resident


@jax.jit
def qmix_forward(x, c0, h0, params):
    """x: (1, SEQ_LEN, N_STATE) -- unused (matches the reference forward, which
    ignores x and recomputes the same carry-free expression SEQ_LEN times).
    Returns the (N_RB,) output of fc(lstm_in(c0) + lstm_hidden(h0))."""
    del x  # the reference forward never touches x

    # lane-dense activation row: [ c0 (32) | h0 (32) | 1.0 | zeros ... ]  -> (1, 128)
    a = jnp.zeros((1, K_PAD), jnp.float32)
    a = a.at[0, :N_STATE].set(c0)
    a = a.at[0, N_STATE:N_STATE + N_HIDDEN].set(h0)
    a = a.at[0, BIAS_COL].set(1.0)

    vmem = pl.BlockSpec(memory_space=pltpu.MemorySpace.VMEM)
    out = pl.pallas_call(
        _qmix_kernel,
        out_shape=jax.ShapeDtypeStruct((1, N_PAD), jnp.float32),
        in_specs=[vmem, vmem],
        out_specs=vmem,
    )(a, params)
    return out[0, :N_RB]


def _init_linear(key, fan_in, fan_out):
    """Deterministic init mimicking torch.nn.Linear (uniform +/- 1/sqrt(fan_in)).
    Returns weight already transposed to (in, out)."""
    kw, kb = jax.random.split(key)
    bound = 1.0 / jnp.sqrt(jnp.float32(fan_in))
    w = jax.random.uniform(kw, (fan_in, fan_out), jnp.float32, -bound, bound)
    b = jax.random.uniform(kb, (fan_out,), jnp.float32, -bound, bound)
    return w, b


if __name__ == "__main__":
    key = jax.random.PRNGKey(0)
    k_x, k_c0, k_h0, k_in, k_hid, k_fc = jax.random.split(key, 6)

    # inputs / buffers (same roles as the torch module's __init__)
    x = jax.random.uniform(k_x, (1, SEQ_LEN, N_STATE), jnp.float32)
    c0 = jax.random.uniform(k_c0, (N_STATE,), jnp.float32)
    h0 = jax.random.uniform(k_h0, (N_HIDDEN,), jnp.float32)

    w_in, b_in = _init_linear(k_in, N_STATE, N_HIDDEN)
    w_hid, b_hid = _init_linear(k_hid, N_HIDDEN, N_HIDDEN)
    w_fc, b_fc = _init_linear(k_fc, N_HIDDEN, N_RB)

    params = pack_params(w_in, b_in, w_hid, b_hid, w_fc, b_fc)

    out = qmix_forward(x, c0, h0, params)
    out = jax.block_until_ready(out)

    # reference (plain JAX) check -- same math as the PyTorch forward
    h_ref = c0 @ w_in + b_in + h0 @ w_hid + b_hid
    ref = h_ref @ w_fc + b_fc
    assert out.shape == (N_RB,)
    assert jnp.allclose(out, ref, atol=1e-4, rtol=1e-4)

    print("KERNEL_OK")
</pallas_src>

<mosaic_0001>
module attributes {stable_mosaic.version = 11 : i64} {
  func.func @_qmix_kernel(%arg0: memref<1x128xf32, #tpu.memory_space<vmem>>, %arg1: memref<128x128xf32, #tpu.memory_space<vmem>>, %arg2: memref<1x128xf32, #tpu.memory_space<vmem>>) attributes {dimension_semantics = [], scalar_prefetch = 0 : i64, scratch_operands = 0 : i64, tpu.core_type = #tpu.core_type<tc>} {
    %c0 = arith.constant 0 : index
    %c0_0 = arith.constant 0 : index
    %0 = vector.load %arg0[%c0, %c0_0] : memref<1x128xf32, #tpu.memory_space<vmem>>, vector<1x128xf32>
    %c0_1 = arith.constant 0 : index
    %c0_2 = arith.constant 0 : index
    %1 = vector.load %arg1[%c0_1, %c0_2] : memref<128x128xf32, #tpu.memory_space<vmem>>, vector<128x128xf32>
    %cst = arith.constant dense<0.000000e+00> : vector<1x128xf32>
    %2 = tpu.matmul %0, %1, %cst {dimension_numbers = #tpu.dot_dimension_numbers<[1], [0], [0], [1], [0, 0, 1, 1], [], []>} : vector<1x128xf32>, vector<128x128xf32>, vector<1x128xf32> -> vector<1x128xf32>
    %c0_3 = arith.constant 0 : index
    %c0_4 = arith.constant 0 : index
    %3 = vector.load %arg2[%c0_3, %c0_4] : memref<1x128xf32, #tpu.memory_space<vmem>>, vector<1x128xf32>
    tpu.vector_store %arg2[%c0_3, %c0_4], %2 {strides = array<i32>} : memref<1x128xf32, #tpu.memory_space<vmem>>, vector<1x128xf32>,
    return
  }
}

</mosaic_0001>

<bundles_post_ra>
// kernel: qmix_forward.1
= control target key start
LH: loop header
LB: loop body
LE: loop exit
PB: predicated region body
PF: predicated region fallthrough
CT: control target
= control target key end

     0   :  { %7 = vsyncpa [#allocation3], 0  ;;  %s197_s9 = smov [#allocation2]   ;;  %s226_s0 = inlined_call_operand.vmem [shape: f32[1,128], index: 0, kind: input, shape index: {}]   ;;  %s227_s1 = inlined_call_operand.hbm [shape: f32[128,128], index: 1, kind: input, shape index: {}]   ;;  %s228_s2 = inlined_call_operand.vmem [shape: f32[1,128], index: 2, kind: output, shape index: {}]  }
   0x1   :  { %s15_s10 = sshll.u32 %s197_s9, 4  ;;  %s16_s10 = int_to_ptr.vmem [resolvable:$true] %s15_s10 }
   0x2   :  { %s183_s11 = scalar_lea.vmem %s16_s10, 2048  ;;  %p188_p1 = scmp.lt.s32.totalorder %s16_s10, %s16_s10 }
   0x3   :  { %p184_p0 = scmp.ne.s32.totalorder %s16_s10, %s183_s11  ;;  %p189_p2 = scmp.lt.s32.totalorder %s183_s11, %s183_s11 }
   0x5   :  { %p190_p3 = por %p189_p2, %p188_p1 }
   0x7   :  { %p191_p4 = pnand %p190_p3, %p184_p0 }
   0x9   :  { %194 = shalt.err (!%p191_p4)
}
   0xa   :  { %s198_s12 = smov 128   ;;  %s199_s13 = smov 8  }
   0xb   :  { %21 = dma.hbm_to_vmem [thread:$0]  %s227_s1, 2048, %s16_s10, [#allocation3], %s198_s12, %s198_s12, %s199_s13  }
   0xc   :  { %195 = dma.done.wait [#allocation3], 2048  }
   0xd   :  { %196 = vsyncadd [#allocation3], 4294965248  ;;  %v200_v0 = vmov 0.0   ;;  %vm201_vm0 = vmmov 0   ;;  %v41_v1 = vld [vmem:[#allocation2 + $0x78] sm:$0xff]  ;;  %v40_v2 = vld [vmem:[#allocation2 + $0x70] sm:$0xff] }
   0xe   :  { %135 = vmatprep.subr.mxu0 %v200_v0  ;;  %167 = vmatprep.mubr.msk.f32.mxu0 %vm201_vm0, %v200_v0  ;;  %v39_v3 = vld [vmem:[#allocation2 + $0x68] sm:$0xff]  ;;  %v38_v4 = vld [vmem:[#allocation2 + $0x60] sm:$0xff]  ;;  %v37_v5 = vld [vmem:[#allocation2 + $0x58] sm:$0xff] }
   0xf   :  { %136 = vmatpush3.msra.mxu0 %v41_v1  ;;  %v36_v6 = vld [vmem:[#allocation2 + $0x50] sm:$0xff]  ;;  %v35_v7 = vld [vmem:[#allocation2 + $0x48] sm:$0xff]  ;;  %v34_v8 = vld [vmem:[#allocation2 + $0x40] sm:$0xff] }
  0x10   :  { %137 = vmatprep.subr.mxu0 %v200_v0  ;;  %v33_v9 = vld [vmem:[#allocation2 + $0x38] sm:$0xff]  ;;  %v32_v10 = vld [vmem:[#allocation2 + $0x30] sm:$0xff]  ;;  %v31_v11 = vld [vmem:[#allocation2 + $0x28] sm:$0xff] }
  0x11   :  { %138 = vmatpush3.msra.mxu0 %v40_v2  ;;  %v30_v12 = vld [vmem:[#allocation2 + $0x20] sm:$0xff]  ;;  %v29_v13 = vld [vmem:[#allocation2 + $0x18] sm:$0xff]  ;;  %v28_v14 = vld [vmem:[#allocation2 + $0x10] sm:$0xff] }
  0x12   :  { %139 = vmatprep.subr.mxu0 %v200_v0  ;;  %v27_v15 = vld [vmem:[#allocation2 + $0x8] sm:$0xff]  ;;  %v26_v16 = vld [vmem:[#allocation2] sm:$0xff] }
  0x13   :  { %140 = vmatpush3.msra.mxu0 %v39_v3  ;;  %v25_v17 = vld [vmem:[%s226_s0] sm:$0x1] }
  0x14   :  { %141 = vmatprep.subr.mxu0 %v200_v0 }
  0x15   :  { %142 = vmatpush3.msra.mxu0 %v38_v4 }
  0x16   :  { %143 = vmatprep.subr.mxu0 %v200_v0 }
  0x17   :  { %144 = vmatpush3.msra.mxu0 %v37_v5 }
  0x18   :  { %145 = vmatprep.subr.mxu0 %v200_v0 }
  0x19   :  { %146 = vmatpush3.msra.mxu0 %v36_v6 }
  0x1a   :  { %147 = vmatprep.subr.mxu0 %v200_v0 }
  0x1b   :  { %148 = vmatpush3.msra.mxu0 %v35_v7 }
  0x1c   :  { %149 = vmatprep.subr.mxu0 %v200_v0 }
  0x1d   :  { %150 = vmatpush3.msra.mxu0 %v34_v8 }
  0x1e   :  { %151 = vmatprep.subr.mxu0 %v200_v0 }
  0x1f   :  { %152 = vmatpush3.msra.mxu0 %v33_v9 }
  0x20   :  { %153 = vmatprep.subr.mxu0 %v200_v0 }
  0x21   :  { %154 = vmatpush3.msra.mxu0 %v32_v10 }
  0x22   :  { %155 = vmatprep.subr.mxu0 %v200_v0 }
  0x23   :  { %156 = vmatpush3.msra.mxu0 %v31_v11 }
  0x24   :  { %157 = vmatprep.subr.mxu0 %v200_v0 }
  0x25   :  { %158 = vmatpush3.msra.mxu0 %v30_v12 }
  0x26   :  { %159 = vmatprep.subr.mxu0 %v200_v0 }
  0x27   :  { %160 = vmatpush3.msra.mxu0 %v29_v13 }
  0x28   :  { %161 = vmatprep.subr.mxu0 %v200_v0 }
  0x29   :  { %162 = vmatpush3.msra.mxu0 %v28_v14 }
  0x2a   :  { %163 = vmatprep.subr.mxu0 %v200_v0 }
  0x2b   :  { %164 = vmatpush3.msra.mxu0 %v27_v15 }
  0x2c   :  { %165 = vmatprep.subr.mxu0 %v200_v0 }
  0x2d   :  { %166 = vmatpush3.msra.mxu0 %v26_v16 }
  0x2e   :  { %168 = vmatmul.mubr.f32.vlgmr.msra.gmra.mxu0 %v25_v17 }
  0xee   :  { %v108_v18 = vpop.f32.mrf.mxu0 }
  0xef   :  { %112 = vst [vmem:[%s228_s2] sm:$0x1] %v108_v18 }
  0xf0   :  { %v169_v19 = vpop.f32.mrf.mxu0 }
  0xf1   :  { %117 = vsyncpa [#allocation3], 1 }

</bundles_post_ra>
